<compile_context>
chip_gen: v7x
topology: tpu7x:2x2x1
jax: 0.10.0
libtpu: 0.0.40
codegen_flags: <defaults>
</compile_context>

<pallas_src>
import functools

import jax
import jax.numpy as jnp
from jax.experimental import pallas as pl
from jax.experimental.pallas import tpu as pltpu


def _round_up(x, m):
    return (x + m - 1) // m * m


# ----------------------------------------------------------------------------
# Generation-aware defaults (computed once at import; wrong guesses can only
# cost performance, never a compile failure, because the fallback is the
# conservative configuration that is known to compile).
# ----------------------------------------------------------------------------
def _tpu_hw_defaults():
    kind = ""
    try:
        kind = jax.devices()[0].device_kind.lower()
    except Exception:
        pass
    vmem_cap = None
    try:
        vmem_cap = int(pltpu.get_tpu_info().vmem_capacity_bytes)
    except Exception:
        vmem_cap = None

    v7_like = ("v7" in kind) or ("7x" in kind)
    big_vmem = (not v7_like) and (
        (vmem_cap is not None and vmem_cap >= (96 << 20))
        or ("v5 lite" in kind) or ("v5e" in kind) or ("v6" in kind))
    if big_vmem:
        budget, limit = 48 << 20, 80 << 20      # v5e / v6e: 128 MiB physical VMEM
    else:
        budget, limit = 20 << 20, 32 << 20      # v7x (64 MiB) / unknown: stay safe

    wide_mxu = ("v6" in kind) or v7_like        # 2x256x256 MXU -> 256-wide N tile pays off
    two_cores = v7_like                         # 2 TensorCores per chip
    return budget, limit, wide_mxu, two_cores


_VMEM_BUDGET, _VMEM_LIMIT, _WIDE_MXU, _TWO_CORES = _tpu_hw_defaults()


# ----------------------------------------------------------------------------
# Kernel
# ----------------------------------------------------------------------------
def _conv_block_kernel(xm_ref, xh_ref, w_ref, b_ref, o_ref):
    """Fused conv3x3(pad=1) + bias + ReLU + maxpool2x2 on one tile of pooled rows.

    xm_ref: (1, TR,  W2p, Cq)    space-to-depth input rows [m*TR, (m+1)*TR)
    xh_ref: (1, 1,   W2p, Cq)    one halo row (row (m+1)*TR of the same array)
    w_ref : (1, 4, Cq, 4*TC)     per-shift weights; last dim = parity-major x TC
    b_ref : (1, 1, TC)           bias (f32)
    o_ref : (1, TR*Wout, TC)     pooled output tile (lane-dense)
    """
    tr = xm_ref.shape[1]
    cq = xm_ref.shape[3]
    m = o_ref.shape[1]
    tc = o_ref.shape[2]
    wout = m // tr

    # Local window of TR+1 half-res rows (main tile + 1-row halo).
    x = jnp.concatenate([xm_ref[0], xh_ref[0]], axis=0)          # (TR+1, W2p, Cq)

    w_all = w_ref[0]                                             # (4, Cq, 4*TC)

    # Four shifted matmuls with f32 accumulation.  The N dimension of each matmul
    # packs the four conv-output (pooling) parities as four contiguous TC-wide
    # lane slabs, so the pool below is pure VPU work on free lane slices.
    acc = None
    for s, (ay, ax) in enumerate(((0, 0), (0, 1), (1, 0), (1, 1))):
        lhs = x[ay:ay + tr, ax:ax + wout, :].reshape(m, cq)
        part = jnp.dot(lhs, w_all[s], preferred_element_type=jnp.float32)
        acc = part if acc is None else acc + part                # (M, 4*TC) f32

    # MaxPool2d(2, 2): max over the four parity slabs (three VPU maxima).
    pooled = jnp.maximum(jnp.maximum(acc[:, 0:tc], acc[:, tc:2 * tc]),
                         jnp.maximum(acc[:, 2 * tc:3 * tc], acc[:, 3 * tc:4 * tc]))
    # bias is identical across parities and ReLU is monotonic, so
    # max_p relu(x_p + b) == relu(max_p(x_p) + b): add bias / ReLU once, after the max.
    pooled = jnp.maximum(pooled + b_ref[0], 0.0)

    o_ref[0] = pooled.astype(o_ref.dtype)


# ----------------------------------------------------------------------------
# Parameter packing: PyTorch OIHW conv weights -> per-shift matmul weights.
#
# With xs[n, a, b, (2qy+qx)*Cin + c] = xpad[n, 2a+qy, 2b+qx, c], the conv output
# at parity (py,px) of pooled pixel (y2,x2) is
#   sum_{ay,ax in {0,1}}  xs[y2+ay, x2+ax, :] @ Wk[2ay+ax, :, 2py+px, :]
# where Wk[s, (2qy+qx)Cin+c, p, o] = w[o, c, 2ay+qy-py, 2ax+qx-px] (0 if the tap
# index falls outside the 3x3 window).
# ----------------------------------------------------------------------------
def _pack_params(w_oihw, b, c_pad, c_tile, compute_dtype):
    cout, cin, kh, kw = w_oihw.shape
    assert kh == 3 and kw == 3, "ConvBlock kernel implements filter_size=3"
    cq = 4 * cin
    n_cc = c_pad // c_tile

    wt = jnp.transpose(w_oihw, (2, 3, 1, 0))                     # (3, 3, Cin, Cout)
    wk = jnp.zeros((4, cq, 4, c_pad), dtype=jnp.float32)
    for ay in range(2):
        for ax in range(2):
            s = 2 * ay + ax
            for qy in range(2):
                for qx in range(2):
                    k0 = (2 * qy + qx) * cin
                    for py in range(2):
                        for px in range(2):
                            dy = 2 * ay + qy - py
                            dx = 2 * ax + qx - px
                            if 0 <= dy <= 2 and 0 <= dx <= 2:
                                p = 2 * py + px
                                wk = wk.at[s, k0:k0 + cin, p, :cout].set(wt[dy, dx])

    # Split Cout into cc blocks, keep the (parity, within-tile) order lane-major
    # so the kernel's lane-slab slices line up with the matmul columns.
    wk = wk.reshape(4, cq, 4, n_cc, c_tile)
    wk = jnp.transpose(wk, (3, 0, 1, 2, 4)).reshape(n_cc, 4, cq, 4 * c_tile)

    bk = jnp.pad(b.astype(jnp.float32), (0, c_pad - cout)).reshape(n_cc, 1, c_tile)
    return wk.astype(compute_dtype), bk


# ----------------------------------------------------------------------------
# Row-tile chooser (pooled rows per grid step).
# ----------------------------------------------------------------------------
def _choose_row_tile(n_batch, hout, wout, w2p, cq, c_tile, in_bytes, out_bytes,
                     vmem_budget, prefer_even_split):
    g = 1
    while (g * wout) % 8:
        g *= 2                                   # g in {1, 2, 4, 8}: TR*Wout % 8 == 0
    cq_l = _round_up(cq, 128)                    # lane padding of the VMEM tiles
    w2p_s = _round_up(w2p, 8)                    # sublane padding
    wout_s = _round_up(wout, 8)

    def fits(tr):
        m = tr * wout
        x_tiles = 2 * (tr + 1) * w2p_s * cq_l * in_bytes   # main + halo, double-buffered
        x_cat = (tr + 1) * w2p_s * cq_l * in_bytes         # in-kernel concat copy
        lhs_tmp = 4 * tr * wout_s * cq_l * in_bytes        # shifted-slice temporaries
        wgt = 2 * 4 * _round_up(cq, 8) * 4 * c_tile * in_bytes
        acc = m * 4 * c_tile * 4 + m * c_tile * 4          # f32 matmul acc + pooled
        out = 2 * m * c_tile * out_bytes
        return (x_tiles + x_cat + lhs_tmp + wgt + acc + out) <= vmem_budget and m <= 8192

    cands = [t for t in range(g, max(hout, g) + 1, g) if fits(t)]
    if not cands:
        return g
    multi = [t for t in cands if pl.cdiv(hout, t) >= 2] or cands
    if prefer_even_split:
        even = [t for t in multi if (n_batch * pl.cdiv(hout, t)) % 2 == 0]
        if even:
            multi = even
    return max(multi)


# ----------------------------------------------------------------------------
# Shared core: space-to-depth input -> pooled NHWC output.
# ----------------------------------------------------------------------------
def _conv_block_from_s2d(xs, w_oihw, b, hout, wout, out_dtype, compute_dtype):
    """xs: (N, hout+1, wout+1, 4*Cin), already in compute_dtype.
    Returns pooled output (N, hout, wout, Cout) in out_dtype."""
    n = xs.shape[0]
    cq = xs.shape[3]
    cout = w_oihw.shape[0]
    w2p = wout + 1

    c_tile = 256 if (_WIDE_MXU and cout > 128) else 128
    c_pad = _round_up(cout, c_tile)
    n_cc = c_pad // c_tile

    in_bytes = jnp.dtype(compute_dtype).itemsize
    out_bytes = jnp.dtype(out_dtype).itemsize
    tr = _choose_row_tile(n, hout, wout, w2p, cq, c_tile, in_bytes, out_bytes,
                          _VMEM_BUDGET, _TWO_CORES)
    hout_pad = _round_up(hout, tr)
    grid_m = hout_pad // tr
    mpad = hout_pad * wout

    if hout_pad > hout:                                   # relaxed-divisor row padding
        xs = jnp.pad(xs, ((0, 0), (0, hout_pad - hout), (0, 0), (0, 0)))

    wk, bk = _pack_params(w_oihw, b, c_pad, c_tile, compute_dtype)

    out_padded = pl.pallas_call(
        _conv_block_kernel,
        out_shape=jax.ShapeDtypeStruct((n, mpad, c_pad), out_dtype),
        grid_spec=pltpu.PrefetchScalarGridSpec(
            num_scalar_prefetch=0,
            # cc innermost: the big x tile's block index is unchanged across cc,
            # so Pallas does not re-DMA it per output-channel block.
            grid=(n, grid_m, n_cc),
            in_specs=[
                # Main pooled-row tile (non-overlapping in HBM).
                pl.BlockSpec((1, tr, w2p, cq),
                             lambda nn, mm, cc: (nn, mm, 0, 0)),
                # 1-row halo: row (mm+1)*tr of the SAME array (block row size 1),
                # so the overlap between row tiles costs one extra row, not a
                # re-stream of the whole tile.
                pl.BlockSpec((1, 1, w2p, cq),
                             lambda nn, mm, cc, _tr=tr: (nn, (mm + 1) * _tr, 0, 0)),
                pl.BlockSpec((1, 4, cq, 4 * c_tile),
                             lambda nn, mm, cc: (cc, 0, 0, 0)),
                pl.BlockSpec((1, 1, c_tile),
                             lambda nn, mm, cc: (cc, 0, 0)),
                # NOTE: if a trace shows exposed DMA on the main x tile (most
                # likely on v5e), add pipeline_mode=pl.Buffered(3) to in_specs[0].
            ],
            out_specs=pl.BlockSpec((1, tr * wout, c_tile),
                                   lambda nn, mm, cc: (nn, mm, cc)),
        ),
        compiler_params=pltpu.CompilerParams(
            dimension_semantics=("parallel", "parallel", "parallel"),
            vmem_limit_bytes=_VMEM_LIMIT,
        ),
    )(xs, xs, wk, bk)

    # TODO(synk): for Cout << 128 the c_pad lane padding still writes ~(128/Cout)x
    # the useful channels; a bf16 output store or packing several pixel tiles into
    # the lane axis would cut that writeback if the consumer allows it.
    out = out_padded[:, :hout * wout, :cout]
    return out.reshape(n, hout, wout, cout)


# ----------------------------------------------------------------------------
# Public entry points.
# ----------------------------------------------------------------------------
@functools.partial(jax.jit, static_argnames=("compute_dtype",))
def conv_block_forward(x_nchw, w_oihw, b, *, compute_dtype=jnp.bfloat16):
    """ConvBlock forward (PyTorch layouts): x [N,Cin,H,W] -> [N,Cout,H//2,W//2].

    compute_dtype=jnp.bfloat16 runs the conv at bf16 MXU precision with f32
    accumulation; pass jnp.float32 for an f32-exact match to PyTorch.
    """
    n, cin, h, w = x_nchw.shape
    assert h % 2 == 0 and w % 2 == 0, "ConvBlock kernel requires even H and W"
    # TODO(synk): odd H/W (PyTorch floor-pool drops the last row/col) not handled.
    hout, wout = h // 2, w // 2

    # NCHW -> padded -> space-to-depth in ONE shuffle (no separate NHWC pass):
    # xs[n, a, b, (2qy+qx)*Cin + c] = xpad[n, c, 2a+qy, 2b+qx].
    xq = x_nchw.astype(compute_dtype)
    xp = jnp.pad(xq, ((0, 0), (0, 0), (1, 1), (1, 1)))           # conv padding=1
    xs = xp.reshape(n, cin, hout + 1, 2, wout + 1, 2)
    xs = jnp.transpose(xs, (0, 2, 4, 3, 5, 1))                   # (n, a, b, qy, qx, c)
    xs = xs.reshape(n, hout + 1, wout + 1, 4 * cin)

    out = _conv_block_from_s2d(xs, w_oihw, b, hout, wout, x_nchw.dtype, compute_dtype)
    # TODO(synk): in an NHWC-resident model use conv_block_forward_nhwc and drop
    # this transpose (plus the one folded into the space-to-depth above).
    return jnp.transpose(out, (0, 3, 1, 2))


@functools.partial(jax.jit, static_argnames=("compute_dtype",))
def conv_block_forward_nhwc(x_nhwc, w_oihw, b, *, compute_dtype=jnp.bfloat16):
    """NHWC-native ConvBlock forward: x [N,H,W,Cin] -> [N,H//2,W//2,Cout].

    Use this in a pipeline that keeps activations NHWC end-to-end: it avoids both
    NCHW<->NHWC layout transposes around the kernel.
    """
    n, h, w, cin = x_nhwc.shape
    assert h % 2 == 0 and w % 2 == 0, "ConvBlock kernel requires even H and W"
    hout, wout = h // 2, w // 2

    xq = x_nhwc.astype(compute_dtype)
    xp = jnp.pad(xq, ((0, 0), (1, 1), (1, 1), (0, 0)))
    xs = xp.reshape(n, hout + 1, 2, wout + 1, 2, cin)
    xs = jnp.transpose(xs, (0, 1, 3, 2, 4, 5))                   # (n, a, b, qy, qx, c)
    xs = xs.reshape(n, hout + 1, wout + 1, 4 * cin)

    return _conv_block_from_s2d(xs, w_oihw, b, hout, wout, x_nhwc.dtype, compute_dtype)


# ----------------------------------------------------------------------------
# Pure-JAX reference and self-test.
# ----------------------------------------------------------------------------
def _reference_forward(x_nchw, w_oihw, b):
    """conv3x3(pad=1) -> +bias -> ReLU -> maxpool2x2 (PyTorch ConvBlock defaults)."""
    y = jax.lax.conv_general_dilated(
        x_nchw, w_oihw, window_strides=(1, 1), padding=((1, 1), (1, 1)),
        dimension_numbers=("NCHW", "OIHW", "NCHW"))
    y = y + b.reshape(1, -1, 1, 1)
    y = jnp.maximum(y, 0.0)
    y = jax.lax.reduce_window(
        y, -jnp.inf, jax.lax.max,
        window_dimensions=(1, 1, 2, 2), window_strides=(1, 1, 2, 2),
        padding="VALID")
    return y


if __name__ == "__main__":
    N, Cin, Cout, H, W = 2, 4, 8, 16, 16

    key = jax.random.PRNGKey(0)
    kx, kw, kb = jax.random.split(key, 3)

    x = jax.random.normal(kx, (N, Cin, H, W), dtype=jnp.float32)
    # PyTorch Conv2d-style params: [Cout, Cin, 3, 3], [Cout].
    fan_in = Cin * 3 * 3
    bound = 1.0 / (fan_in ** 0.5)
    w = jax.random.uniform(kw, (Cout, Cin, 3, 3), jnp.float32, -bound, bound)
    b = jax.random.uniform(kb, (Cout,), jnp.float32, -bound, bound)

    out = conv_block_forward(x, w, b)
    out = jax.block_until_ready(out)

    # Reference computed from the same bf16-quantized inputs (the kernel feeds the
    # MXU bf16 and accumulates in f32, so only summation-order noise remains).
    xq = x.astype(jnp.bfloat16).astype(jnp.float32)
    wq = w.astype(jnp.bfloat16).astype(jnp.float32)
    ref = _reference_forward(xq, wq, b)

    assert out.shape == (N, Cout, H // 2, W // 2)
    err = float(jnp.max(jnp.abs(out - ref)))
    assert jnp.allclose(out, ref, atol=1e-3, rtol=1e-3), f"max abs err {err}"

    # NHWC-native path (no layout transposes) must agree with the NCHW wrapper.
    out_nhwc = conv_block_forward_nhwc(jnp.transpose(x, (0, 2, 3, 1)), w, b)
    out_nhwc = jax.block_until_ready(out_nhwc)
    assert jnp.allclose(jnp.transpose(out_nhwc, (0, 3, 1, 2)), out,
                        atol=1e-5, rtol=1e-5)

    print("KERNEL_OK")
</pallas_src>

<mosaic_0001>
module attributes {stable_mosaic.version = 11 : i64} {
  func.func @_conv_block_kernel(%arg0: i32, %arg1: i32, %arg2: i32, %arg3: memref<1x7x9x16xbf16, #tpu.memory_space<vmem>>, %arg4: memref<1x1x9x16xbf16, #tpu.memory_space<vmem>>, %arg5: memref<1x4x16x512xbf16, #tpu.memory_space<vmem>>, %arg6: memref<1x1x128xf32, #tpu.memory_space<vmem>>, %arg7: memref<1x56x128xf32, #tpu.memory_space<vmem>>) attributes {dimension_semantics = [#tpu.dimension_semantics<parallel>, #tpu.dimension_semantics<parallel>, #tpu.dimension_semantics<parallel>], iteration_bounds = array<i64: 2, 2, 1>, scalar_prefetch = 0 : i64, scratch_operands = 0 : i64, tpu.core_type = #tpu.core_type<tc>, window_params = [{transform_indices = @transform_0, window_bounds = array<i64: 1, 7, 9, 16>}, {transform_indices = @transform_1, window_bounds = array<i64: 1, 1, 9, 16>}, {transform_indices = @transform_2, window_bounds = array<i64: 1, 4, 16, 512>}, {transform_indices = @transform_3, window_bounds = array<i64: 1, 1, 128>}, {transform_indices = @transform_4, window_bounds = array<i64: 1, 56, 128>}]} {
    %c0 = arith.constant 0 : index
    %c0_0 = arith.constant 0 : index
    %c0_1 = arith.constant 0 : index
    %c0_2 = arith.constant 0 : index
    %0 = vector.load %arg3[%c0, %c0_0, %c0_1, %c0_2] : memref<1x7x9x16xbf16, #tpu.memory_space<vmem>>, vector<1x7x9x16xbf16>
    %1 = vector.shape_cast %0 : vector<1x7x9x16xbf16> to vector<7x9x16xbf16>
    %c0_3 = arith.constant 0 : index
    %c0_4 = arith.constant 0 : index
    %c0_5 = arith.constant 0 : index
    %c0_6 = arith.constant 0 : index
    %2 = vector.load %arg4[%c0_3, %c0_4, %c0_5, %c0_6] : memref<1x1x9x16xbf16, #tpu.memory_space<vmem>>, vector<1x1x9x16xbf16>
    %3 = vector.shape_cast %2 : vector<1x1x9x16xbf16> to vector<1x9x16xbf16>
    %4 = tpu.concatenate %1, %3 in 0 : vector<7x9x16xbf16>, vector<1x9x16xbf16> -> vector<8x9x16xbf16>
    %c0_7 = arith.constant 0 : index
    %c0_8 = arith.constant 0 : index
    %c0_9 = arith.constant 0 : index
    %c0_10 = arith.constant 0 : index
    %5 = vector.load %arg5[%c0_7, %c0_8, %c0_9, %c0_10] : memref<1x4x16x512xbf16, #tpu.memory_space<vmem>>, vector<1x4x16x512xbf16>
    %6 = vector.shape_cast %5 : vector<1x4x16x512xbf16> to vector<4x16x512xbf16>
    %7 = vector.extract_strided_slice %4 {offsets = [0, 0, 0], sizes = [7, 8, 16], strides = [1, 1, 1]} : vector<8x9x16xbf16> to vector<7x8x16xbf16>
    %8 = vector.shape_cast %7 : vector<7x8x16xbf16> to vector<56x16xbf16>
    %9 = vector.extract_strided_slice %6 {offsets = [0, 0, 0], sizes = [1, 16, 512], strides = [1, 1, 1]} : vector<4x16x512xbf16> to vector<1x16x512xbf16>
    %10 = vector.shape_cast %9 : vector<1x16x512xbf16> to vector<16x512xbf16>
    %cst = arith.constant dense<0.000000e+00> : vector<56x512xf32>
    %11 = tpu.matmul %8, %10, %cst {dimension_numbers = #tpu.dot_dimension_numbers<[1], [0], [0], [1], [0, 0, 1, 1], [], []>} : vector<56x16xbf16>, vector<16x512xbf16>, vector<56x512xf32> -> vector<56x512xf32>
    %12 = vector.extract_strided_slice %4 {offsets = [0, 1, 0], sizes = [7, 8, 16], strides = [1, 1, 1]} : vector<8x9x16xbf16> to vector<7x8x16xbf16>
    %13 = vector.shape_cast %12 : vector<7x8x16xbf16> to vector<56x16xbf16>
    %14 = vector.extract_strided_slice %6 {offsets = [1, 0, 0], sizes = [1, 16, 512], strides = [1, 1, 1]} : vector<4x16x512xbf16> to vector<1x16x512xbf16>
    %15 = vector.shape_cast %14 : vector<1x16x512xbf16> to vector<16x512xbf16>
    %cst_11 = arith.constant dense<0.000000e+00> : vector<56x512xf32>
    %16 = tpu.matmul %13, %15, %cst_11 {dimension_numbers = #tpu.dot_dimension_numbers<[1], [0], [0], [1], [0, 0, 1, 1], [], []>} : vector<56x16xbf16>, vector<16x512xbf16>, vector<56x512xf32> -> vector<56x512xf32>
    %17 = arith.addf %11, %16 : vector<56x512xf32>
    %18 = vector.extract_strided_slice %4 {offsets = [1, 0, 0], sizes = [7, 8, 16], strides = [1, 1, 1]} : vector<8x9x16xbf16> to vector<7x8x16xbf16>
    %19 = vector.shape_cast %18 : vector<7x8x16xbf16> to vector<56x16xbf16>
    %20 = vector.extract_strided_slice %6 {offsets = [2, 0, 0], sizes = [1, 16, 512], strides = [1, 1, 1]} : vector<4x16x512xbf16> to vector<1x16x512xbf16>
    %21 = vector.shape_cast %20 : vector<1x16x512xbf16> to vector<16x512xbf16>
    %cst_12 = arith.constant dense<0.000000e+00> : vector<56x512xf32>
    %22 = tpu.matmul %19, %21, %cst_12 {dimension_numbers = #tpu.dot_dimension_numbers<[1], [0], [0], [1], [0, 0, 1, 1], [], []>} : vector<56x16xbf16>, vector<16x512xbf16>, vector<56x512xf32> -> vector<56x512xf32>
    %23 = arith.addf %17, %22 : vector<56x512xf32>
    %24 = vector.extract_strided_slice %4 {offsets = [1, 1, 0], sizes = [7, 8, 16], strides = [1, 1, 1]} : vector<8x9x16xbf16> to vector<7x8x16xbf16>
    %25 = vector.shape_cast %24 : vector<7x8x16xbf16> to vector<56x16xbf16>
    %26 = vector.extract_strided_slice %6 {offsets = [3, 0, 0], sizes = [1, 16, 512], strides = [1, 1, 1]} : vector<4x16x512xbf16> to vector<1x16x512xbf16>
    %27 = vector.shape_cast %26 : vector<1x16x512xbf16> to vector<16x512xbf16>
    %cst_13 = arith.constant dense<0.000000e+00> : vector<56x512xf32>
    %28 = tpu.matmul %25, %27, %cst_13 {dimension_numbers = #tpu.dot_dimension_numbers<[1], [0], [0], [1], [0, 0, 1, 1], [], []>} : vector<56x16xbf16>, vector<16x512xbf16>, vector<56x512xf32> -> vector<56x512xf32>
    %29 = arith.addf %23, %28 : vector<56x512xf32>
    %30 = vector.extract_strided_slice %29 {offsets = [0, 0], sizes = [56, 128], strides = [1, 1]} : vector<56x512xf32> to vector<56x128xf32>
    %31 = vector.extract_strided_slice %29 {offsets = [0, 128], sizes = [56, 128], strides = [1, 1]} : vector<56x512xf32> to vector<56x128xf32>
    %32 = arith.maximumf %30, %31 : vector<56x128xf32>
    %33 = vector.extract_strided_slice %29 {offsets = [0, 256], sizes = [56, 128], strides = [1, 1]} : vector<56x512xf32> to vector<56x128xf32>
    %34 = vector.extract_strided_slice %29 {offsets = [0, 384], sizes = [56, 128], strides = [1, 1]} : vector<56x512xf32> to vector<56x128xf32>
    %35 = arith.maximumf %33, %34 : vector<56x128xf32>
    %36 = arith.maximumf %32, %35 : vector<56x128xf32>
    %c0_14 = arith.constant 0 : index
    %c0_15 = arith.constant 0 : index
    %c0_16 = arith.constant 0 : index
    %37 = vector.load %arg6[%c0_14, %c0_15, %c0_16] : memref<1x1x128xf32, #tpu.memory_space<vmem>>, vector<1x1x128xf32>
    %38 = vector.shape_cast %37 : vector<1x1x128xf32> to vector<1x128xf32>
    %39 = vector.broadcast %38 : vector<1x128xf32> to vector<56x128xf32>
    %40 = arith.addf %36, %39 : vector<56x128xf32>
    %cst_17 = arith.constant 0.000000e+00 : f32
    %41 = vector.broadcast %cst_17 : f32 to vector<56x128xf32>
    %42 = arith.maximumf %40, %41 : vector<56x128xf32>
    %c0_18 = arith.constant 0 : index
    %c0_19 = arith.constant 0 : index
    %c0_20 = arith.constant 0 : index
    %43 = vector.load %arg7[%c0_18, %c0_19, %c0_20] : memref<1x56x128xf32, #tpu.memory_space<vmem>>, vector<1x56x128xf32>
    %44 = vector.shape_cast %43 : vector<1x56x128xf32> to vector<56x128xf32>
    %45 = vector.shape_cast %42 : vector<56x128xf32> to vector<1x56x128xf32>
    tpu.vector_store %arg7[%c0_18, %c0_19, %c0_20], %45 {strides = array<i32>} : memref<1x56x128xf32, #tpu.memory_space<vmem>>, vector<1x56x128xf32>,
    return
  }
  func.func @transform_0(%arg0: i32, %arg1: i32, %arg2: i32) -> (i32, i32, i32, i32) {
    %c0_i32 = arith.constant 0 : i32
    %c0_i32_0 = arith.constant 0 : i32
    %c0_i32_1 = arith.constant 0 : i32
    return %arg0, %arg1, %c0_i32, %c0_i32_0 : i32, i32, i32, i32
  }
  func.func @transform_1(%arg0: i32, %arg1: i32, %arg2: i32) -> (i32, i32, i32, i32) {
    %c1_i32 = arith.constant 1 : i32
    %0 = arith.addi %arg1, %c1_i32 : i32
    %c7_i32 = arith.constant 7 : i32
    %1 = arith.muli %0, %c7_i32 : i32
    %c0_i32 = arith.constant 0 : i32
    %c0_i32_0 = arith.constant 0 : i32
    %c0_i32_1 = arith.constant 0 : i32
    return %arg0, %1, %c0_i32, %c0_i32_0 : i32, i32, i32, i32
  }
  func.func @transform_2(%arg0: i32, %arg1: i32, %arg2: i32) -> (i32, i32, i32, i32) {
    %c0_i32 = arith.constant 0 : i32
    %c0_i32_0 = arith.constant 0 : i32
    %c0_i32_1 = arith.constant 0 : i32
    %c0_i32_2 = arith.constant 0 : i32
    return %arg2, %c0_i32, %c0_i32_0, %c0_i32_1 : i32, i32, i32, i32
  }
  func.func @transform_3(%arg0: i32, %arg1: i32, %arg2: i32) -> (i32, i32, i32) {
    %c0_i32 = arith.constant 0 : i32
    %c0_i32_0 = arith.constant 0 : i32
    %c0_i32_1 = arith.constant 0 : i32
    return %arg2, %c0_i32, %c0_i32_0 : i32, i32, i32
  }
  func.func @transform_4(%arg0: i32, %arg1: i32, %arg2: i32) -> (i32, i32, i32) {
    %c0_i32 = arith.constant 0 : i32
    return %arg0, %arg1, %arg2 : i32, i32, i32
  }
}

</mosaic_0001>

<bundles_post_ra>
// kernel: conv_block_forward.1
= control target key start
LH: loop header
LB: loop body
LE: loop exit
PB: predicated region body
PF: predicated region fallthrough
CT: control target
= control target key end

     0   :  { %s1822_s15 = smov 0   ;;  %s1824_s16 = smov 0   ;;  %s2145_s0 = inlined_call_operand.vmem [shape: bf16[2,15,9,16], index: 0, kind: input, shape index: {}, may-alias: {0,1}]   ;;  %s2146_s1 = inlined_call_operand.vmem [shape: bf16[2,15,9,16], index: 1, kind: input, shape index: {}, may-alias: {0,1}]   ;;  %s2147_s2 = inlined_call_operand.vmem [shape: bf16[1,4,16,512], index: 2, kind: input, shape index: {}]   ;;  %s2148_s3 = inlined_call_operand.vmem [shape: f32[1,1,128], index: 3, kind: input, shape index: {}]   ;;  %s2149_s4 = inlined_call_operand.vmem [shape: f32[2,112,128], index: 4, kind: output, shape index: {}]  }
   0x1   :  { %s1826_s17 = smov 0   ;;  %s1828_s18 = smov 0  }
   0x2   :  { %s1830_s19 = smov 0  }
   0x3 LB: > { %s29_s20 = sadd.s32 1, %s1786_s17  ;;  %s33_s21 = sadd.s32 1, %s1790_s18  ;;  %s1794_s19 = sphi %s1830_s19, %s14_s19   ;;  %s1790_s18 = sphi %s1828_s18, %s2155_s18   ;;  %s1786_s17 = sphi %s1826_s17, %s2154_s17   ;;  %s1782_s16 = sphi %s1824_s16, %s2153_s16   ;;  %s1778_s15 = sphi %s1822_s15, %s2152_s15  }
   0x4   : > { %p31_p0 = scmp.ge.s32.totalorder %s29_s20, 2  ;;  %p1512_p1 = scmp.ge.s32.totalorder %s1794_s19, 1 }
   0x5   : > { %p245_p2 = scmp.lt.s32.totalorder %s1794_s19, 5 }
   0x6   : > { %s2157_s20 = smov (%p31_p0, %s29_s20), 0  ;;  %s2159_s21 = smov (!%p31_p0, %s33_s21), %s1790_s18 }
   0x7   : > { %p246_p3 = pnand %p1512_p1, %p245_p2  ;;  %p35_p4 = scmp.ge.s32.totalorder %s2159_s21, 2 }
   0x8   : > { %v1724_v0 = vld [vmem:[%s2147_s2 + $0x24] ss:$16 sps:$4 sm:$0xff] (!%p246_p3)   ;;  %s1858_s24 = smul.u32 (!%p246_p3), 7, %s1778_s15  ;;  %v1726_v1 = vld [vmem:[%s2147_s2 + $0x2c] ss:$16 sps:$4 sm:$0xff] (!%p246_p3)   ;;  %v1796_v2 = vmov (!%p246_p3), 0  }
   0x9   : > { %s2161_s21 = smov (%p35_p4, %s2159_s21), 0  ;;  %249 = sbr.rel (%p246_p3) target bundleno = 378 (0x17a), region = 36 }
   0xa   : > { %572 = vmatprep.mubr.bf16.mxu0 (!%p246_p3), %v1796_v2  ;;  %643 = vmatprep.mubr.bf16.mxu1 (!%p246_p3), %v1796_v2  ;;  %p313_p5 = scmp.lt.s32.totalorder (!%p246_p3), %s1782_s16, 1  ;;  %v1728_v3 = vld [vmem:[%s2147_s2 + $0x20] ss:$16 sps:$4 sm:$0xff] (!%p246_p3)   ;;  %v1729_v4 = vld [vmem:[%s2147_s2 + $0x28] ss:$16 sps:$4 sm:$0xff] (!%p246_p3)   ;;  %p315_p6 = scmp.lt.s32.totalorder (!%p246_p3), %s1858_s24, 14 }
   0xb   : > { %540 = vmatprep.subr.bf16.mxu0 (!%p246_p3), %v1724_v0  ;;  %611 = vmatprep.subr.bf16.mxu1 (!%p246_p3), %v1726_v1  ;;  %v1732_v5 = vld [vmem:[%s2147_s2 + $0x4] ss:$16 sps:$4 sm:$0xff] (!%p246_p3)   ;;  %v1735_v6 = vld [vmem:[%s2147_s2 + $0xc] ss:$16 sps:$4 sm:$0xff] (!%p246_p3)   ;;  %s328_s13 = sadd.s32 (!%p246_p3), 1, %s1778_s15  ;;  %vm527_vm2 = vcmask (!%p246_p3), 130048  }
   0xc   : > { %541 = vmatpush1.bf16.msra.mxu0 (!%p246_p3), %v1728_v3  ;;  %612 = vmatpush1.bf16.msra.mxu1 (!%p246_p3), %v1729_v4  ;;  %vm395_vm0 = vsmask.f32 (!%p246_p3), 3328  ;;  %vm396_vm1 = vsmask.f32 (!%p246_p3), 7440  ;;  %s1890_s26 = smul.u32 (!%p246_p3), 7, %s328_s13  ;;  %p352_p8 = scmp.lt.s32.totalorder (!%p246_p3), %s1858_s24, 13 }
   0xd   : > { %732 = vmatprep.subr.bf16.mxu0 (!%p246_p3), %v1732_v5  ;;  %803 = vmatprep.subr.bf16.mxu1 (!%p246_p3), %v1735_v6  ;;  %vm1921_vm3 = vmor (!%p246_p3), %vm395_vm0, %vm396_vm1  ;;  %v1730_v45 = vld [vmem:[%s2147_s2] ss:$16 sps:$4 sm:$0xff] (!%p246_p3)   ;;  %v1733_v50 = vld [vmem:[%s2147_s2 + $0x8] ss:$16 sps:$4 sm:$0xff] (!%p246_p3)  }
   0xe   : > { %p332_p7 = scmp.lt.s32.totalorder (!%p246_p3), %s1890_s26, 14  ;;  %v1738_v61 = vld [vmem:[%s2147_s2 + $0x44] ss:$16 sps:$4 sm:$0xff] (!%p246_p3)   ;;  %v1741_v3 = vld [vmem:[%s2147_s2 + $0x4c] ss:$16 sps:$4 sm:$0xff] (!%p246_p3)  }
  0x10   : > { %s2163_s16 = smov (!%p313_p5, %s1782_s16), 1  ;;  %s2165_s26 = smov (!%p332_p7, %s1890_s26), 14 }
  0x11   : > { %s316_s7 = scalar_select %p315_p6, %s1858_s24, 14 }
  0x12   : > { %s1681_s10 = smul.u32 30, %s2163_s16  ;;  %s1515_s8 = sshll.u32 %s2165_s26, 1 }
  0x13   : > { %s1513_s11 = sshll.u32 %s316_s7, 1  ;;  %s1682_s7 = smul.u32 14, %s2163_s16 }
  0x14   : > { %s319_s12 = sadd.s32 %s1681_s10, %s1513_s11  ;;  %s336_s9 = sadd.s32 %s1681_s10, %s1515_s8 }
  0x15   : > { %s1514_s14 = sshll.u32 %s319_s12, 2  ;;  %s1516_s11 = sshll.u32 %s336_s9, 2 }
  0x16   : > { %s1888_s25 = scalar_lea.vmem %s2145_s0, %s1514_s14  ;;  %s338_s14 = scalar_lea.vmem %s2146_s1, %s1516_s11 }
  0x17   : > { %v1893_v7 = vld [vmem:[%s1888_s25] sm:$0xf]  ;;  %v364_v8 = vld [vmem:[%s1888_s25 + $0x4] sm:$0x1]  ;;  %v1897_v9 = vld [vmem:[%s1888_s25 + $0x8] sm:$0xf] }
  0x18   : > { %v366_v10 = vld [vmem:[%s1888_s25 + $0xc] sm:$0x1]  ;;  %v399_v11 = vshrl.u32 %v1893_v7, 16  ;;  %v402_v12 = vshll.u32 %v1893_v7, 16  ;;  %v408_v13 = vshll.u32 %v364_v8, 16  ;;  %v413_v14 = vshrl.u32 %v1897_v9, 16 }
  0x19   : > { %v416_v15 = vshll.u32 %v1897_v9, 16  ;;  %v422_v16 = vshll.u32 %v366_v10, 16  ;;  %v1905_v17 = vld [vmem:[%s1888_s25 + $0x10] sm:$0xf]  ;;  %v368_v18 = vld [vmem:[%s1888_s25 + $0x14] sm:$0x1]  ;;  %v1534_v34 = vcombine.low %v1893_v7, %v1897_v9 }
  0x1a   : > { %v401_v19 = vrot.slane %v399_v11, 4  ;;  %v404_v20 = vrot.slane %v402_v12, 5  ;;  %v410_v21 = vrot.slane %v408_v13, 5  ;;  %v415_v22 = vrot.slane %v413_v14, 4  ;;  %v1909_v23 = vld [vmem:[%s1888_s25 + $0x18] sm:$0xf] }
  0x1b   : > { %v418_v24 = vrot.slane %v416_v15, 5  ;;  %v424_v25 = vrot.slane %v422_v16, 5  ;;  %v370_v26 = vld [vmem:[%s1888_s25 + $0x1c] sm:$0x1]  ;;  %v427_v27 = vshrl.u32 %v1905_v17, 16  ;;  %v430_v28 = vshll.u32 %v1905_v17, 16 }
  0x1c   : > { %v405_v29 = vor.u32 %v404_v20, %v401_v19  ;;  %v436_v30 = vshll.u32 %v368_v18, 16  ;;  %v441_v31 = vshrl.u32 %v1909_v23, 16  ;;  %v444_v32 = vshll.u32 %v1909_v23, 16  ;;  %v1917_v33 = vld [vmem:[%s1888_s25 + $0x20] sm:$0xf]  ;;  %s2167_s24 = smov (!%p352_p8, %s1858_s24), 13 }
  0x1d   : > { %v419_v35 = vor.u32 %v418_v24, %v415_v22  ;;  %v429_v36 = vrot.slane %v427_v27, 4  ;;  %v432_v37 = vrot.slane %v430_v28, 5  ;;  %v450_v38 = vshll.u32 %v370_v26, 16  ;;  %v372_v39 = vld [vmem:[%s1888_s25 + $0x24] sm:$0x1]  ;;  %s358_s8 = sadd.s32 %s1682_s7, %s2167_s24 }
  0x1e   : > { %v406_v40 = vrot.slane %v405_v29, 4  ;;  %v438_v41 = vrot.slane %v436_v30, 5  ;;  %v443_v42 = vrot.slane %v441_v31, 4  ;;  %v446_v43 = vrot.slane %v444_v32, 5  ;;  %v1927_v44 = vld [vmem:[%s1888_s25 + $0x28] sm:$0xf] }
  0x1f   : > { %v420_v46 = vrot.slane %v419_v35, 4  ;;  %v433_v47 = vor.u32 %v432_v37, %v429_v36  ;;  %v452_v48 = vrot.slane %v450_v38, 5  ;;  %v455_v49 = vshrl.u32 %v1917_v33, 16  ;;  %v374_v53 = vld [vmem:[%s1888_s25 + $0x2c] sm:$0x1]  ;;  %s1517_s12 = sshll.u32 %s358_s8, 3 }
  0x20   : > { %v411_v51 = vsel %vm1921_vm3, %v406_v40, %v410_v21  ;;  %v447_v52 = vor.u32 %v446_v43, %v443_v42  ;;  %v458_v54 = vshll.u32 %v1917_v33, 16  ;;  %v464_v55 = vshll.u32 %v372_v39, 16  ;;  %v1945_v60 = vld [vmem:[%s1888_s25 + $0x30] sm:$0xf]  ;;  %v376_v10 = vld [vmem:[%s1888_s25 + $0x34] sm:$0x1]  ;;  %s2115_s13 = scalar_lea.vmem %s2149_s4, %s1517_s12 }
  0x21   : > { %v425_v56 = vsel %vm1921_vm3, %v420_v46, %v424_v25  ;;  %v434_v57 = vrot.slane %v433_v47, 4  ;;  %v457_v58 = vrot.slane %v455_v49, 4  ;;  %v469_v59 = vshrl.u32 %v1927_v44, 16  ;;  %v378_v25 = vld [vmem:[%s338_s14 + $0x4] sm:$0x1] }
  0x22   : > { %v1518_v62 = vcombine.low %v411_v51, %v425_v56  ;;  %v448_v63 = vrot.slane %v447_v52, 4  ;;  %v460_v0 = vrot.slane %v458_v54, 5  ;;  %v466_v1 = vrot.slane %v464_v55, 5  ;;  %v1987_v36 = vld [vmem:[%s338_s14] sm:$0xf] }
  0x23   : > { %v439_v4 = vsel %vm1921_vm3, %v434_v57, %v438_v41  ;;  %v471_v5 = vrot.slane %v469_v59, 4  ;;  %v472_v6 = vshll.u32 %v1927_v44, 16  ;;  %v478_v8 = vshll.u32 %v374_v53, 16  ;;  %v1736_v54 = vld [vmem:[%s2147_s2 + $0x40] ss:$16 sps:$4 sm:$0xff]  }
  0x24   : > { %1526 = vmatmul.mubr.msk.bf16.vlgmr.msra.gmra.mrb[0].mxu0 %vm527_vm2, %v1518_v62  ;;  %1530 = vmatmul.mubr.msk.bf16.vlgmr.msra.gmra.mrb[0].mxu1 %vm527_vm2, %v1518_v62  ;;  %v453_v11 = vsel %vm1921_vm3, %v448_v63, %v452_v48  ;;  %v1962_v12 = vcombine.low %v425_v56, %v439_v4  ;;  %v461_v13 = vor.u32 %v460_v0, %v457_v58  ;;  %v483_v14 = vshrl.u32 %v1945_v60, 16  ;;  %v1739_v55 = vld [vmem:[%s2147_s2 + $0x48] ss:$16 sps:$4 sm:$0xff]   ;;  %v1748_v56 = vld [vmem:[%s2147_s2 + $0x64] ss:$16 sps:$4 sm:$0xff]  }
  0x25   : > { %733 = vmatpush1.bf16.msra.mxu0 %v1730_v45  ;;  %804 = vmatpush1.bf16.msra.mxu1 %v1733_v50  ;;  %v474_v15 = vrot.slane %v472_v6, 5  ;;  %v486_v16 = vshll.u32 %v1945_v60, 16  ;;  %v492_v20 = vshll.u32 %v376_v10, 16  ;;  %v1519_v21 = vcombine.low %v439_v4, %v453_v11  ;;  %v1751_v57 = vld [vmem:[%s2147_s2 + $0x6c] ss:$16 sps:$4 sm:$0xff]  }
  0x26   : > { %582 = vmatprep.mubr.bf16.mxu0 %v1796_v2  ;;  %653 = vmatprep.mubr.bf16.mxu1 %v1796_v2  ;;  %v462_v18 = vrot.slane %v461_v13, 4  ;;  %v485_v19 = vrot.slane %v483_v14, 4  ;;  %v480_v27 = vrot.slane %v478_v8, 5  ;;  %v1977_v28 = vcombine.low %v1897_v9, %v1905_v17 }
  0x27   : > { %v475_v22 = vor.u32 %v474_v15, %v471_v5  ;;  %v488_v24 = vrot.slane %v486_v16, 5  ;;  %912 = vmatprep.subr.bf16.mxu0 %v1738_v61  ;;  %983 = vmatprep.subr.bf16.mxu1 %v1741_v3  ;;  %v1981_v29 = vcombine.low %v1909_v23, %v1917_v33  ;;  %v494_v32 = vrot.slane %v492_v20, 5 }
  0x28   : > { %v467_v26 = vsel %vm1921_vm3, %v462_v18, %v466_v1  ;;  %v1985_v35 = vcombine.low %v1927_v44, %v1945_v60  ;;  %v1083_v37 = vshrl.u32 %v1987_v36, 16  ;;  %v1086_v38 = vshll.u32 %v1987_v36, 16 }
  0x29   : > { %v476_v30 = vrot.slane %v475_v22, 4  ;;  %v489_v31 = vor.u32 %v488_v24, %v485_v19  ;;  %v1092_v39 = vshll.u32 %v378_v25, 16  ;;  %v1991_v40 = vcombine.low %v453_v11, %v467_v26 }
  0x2a   : > { %v1085_v42 = vrot.slane %v1083_v37, 4  ;;  %v1088_v43 = vrot.slane %v1086_v38, 5  ;;  %v1535_v7 = vcombine.low %v1905_v17, %v1909_v23  ;;  %v1536_v9 = vcombine.low %v1917_v33, %v1927_v44  ;;  %v1746_v23 = vld [vmem:[%s2147_s2 + $0x60] ss:$16 sps:$4 sm:$0xff]   ;;  %v1749_v33 = vld [vmem:[%s2147_s2 + $0x68] ss:$16 sps:$4 sm:$0xff]  }
  0x2b   : > { %v490_v41 = vrot.slane %v489_v31, 4  ;;  %v481_v45 = vsel %vm1921_vm3, %v476_v30, %v480_v27  ;;  %v1094_v49 = vrot.slane %v1092_v39, 5  ;;  %v1537_v17 = vcombine.low %v1945_v60, %v1945_v60 }
  0x2c   : > { %1527 = vmatmul.mubr.msk.bf16.gmra.mrb[4].mxu0 %vm527_vm2, %v1519_v21  ;;  %1531 = vmatmul.mubr.msk.bf16.gmra.mrb[4].mxu1 %vm527_vm2, %v1519_v21  ;;  %v1089_v48 = vor.u32 %v1088_v43, %v1085_v42  ;;  %v1520_v50 = vcombine.low %v467_v26, %v481_v45  ;;  %v1553_v44 = vcombine.low %v1987_v36, %v1987_v36 }
  0x2d   : > { %592 = vmatprep.mubr.bf16.mxu0 %v1796_v2  ;;  %663 = vmatprep.mubr.bf16.mxu1 %v1796_v2  ;;  %v495_v46 = vsel %vm1921_vm3, %v490_v41, %v494_v32 }
  0x2e   : > { %v2001_v47 = vcombine.low %v481_v45, %v495_v46  ;;  %v1090_v51 = vrot.slane %v1089_v48, 4  ;;  %v1521_v53 = vcombine.low %v495_v46, %v495_v46 }
  0x30   : > { %v2005_v52 = vsel %vm1921_vm3, %v1090_v51, %v1094_v49 }
  0x31   : > { %v1569_v58 = vcombine.low %v2005_v52, %v2005_v52 }
  0x34   : > { %1528 = vmatmul.mubr.msk.bf16.gmra.mrb[8].mxu0 %vm527_vm2, %v1520_v50  ;;  %1532 = vmatmul.mubr.msk.bf16.gmra.mrb[8].mxu1 %vm527_vm2, %v1520_v50 }
  0x35   : > { %602 = vmatprep.mubr.bf16.mxu0 %v1796_v2  ;;  %673 = vmatprep.mubr.bf16.mxu1 %v1796_v2 }
  0x3c   : > { %1529 = vmatmul.mubr.msk.bf16.gmra.mrb[12].mxu0 %vm527_vm2, %v1521_v53  ;;  %1533 = vmatmul.mubr.msk.bf16.gmra.mrb[12].mxu1 %vm527_vm2, %v1521_v53 }
  0x3d   : > { %764 = vmatprep.mubr.bf16.mxu0 %v1796_v2  ;;  %835 = vmatprep.mubr.bf16.mxu1 %v1796_v2 }
  0x44   : > { %1542 = vmatmul.mubr.msk.bf16.vlgmr.msra.gmra.mrb[0].mxu0 %vm527_vm2, %v1534_v34  ;;  %1546 = vmatmul.mubr.msk.bf16.vlgmr.msra.gmra.mrb[0].mxu1 %vm527_vm2, %v1534_v34 }
  0x45   : > { %913 = vmatpush1.bf16.msra.mxu0 %v1736_v54  ;;  %984 = vmatpush1.bf16.msra.mxu1 %v1739_v55 }
  0x46   : > { %774 = vmatprep.mubr.bf16.mxu0 %v1796_v2  ;;  %845 = vmatprep.mubr.bf16.mxu1 %v1796_v2 }
  0x47   : > { %1133 = vmatprep.subr.bf16.mxu0 %v1748_v56  ;;  %1204 = vmatprep.subr.bf16.mxu1 %v1751_v57 }
  0x4c   : > { %1543 = vmatmul.mubr.msk.bf16.gmra.mrb[4].mxu0 %vm527_vm2, %v1535_v7  ;;  %1547 = vmatmul.mubr.msk.bf16.gmra.mrb[4].mxu1 %vm527_vm2, %v1535_v7 }
  0x4d   : > { %784 = vmatprep.mubr.bf16.mxu0 %v1796_v2  ;;  %855 = vmatprep.mubr.bf16.mxu1 %v1796_v2 }
  0x54   : > { %1544 = vmatmul.mubr.msk.bf16.gmra.mrb[8].mxu0 %vm527_vm2, %v1536_v9  ;;  %1548 = vmatmul.mubr.msk.bf16.gmra.mrb[8].mxu1 %vm527_vm2, %v1536_v9 }
  0x55   : > { %794 = vmatprep.mubr.bf16.mxu0 %v1796_v2  ;;  %865 = vmatprep.mubr.bf16.mxu1 %v1796_v2 }
  0x5c   : > { %1545 = vmatmul.mubr.msk.bf16.gmra.mrb[12].mxu0 %vm527_vm2, %v1537_v17  ;;  %1549 = vmatmul.mubr.msk.bf16.gmra.mrb[12].mxu1 %vm527_vm2, %v1537_v17 }
  0x5d   : > { %944 = vmatprep.mubr.bf16.mxu0 %v1796_v2  ;;  %1015 = vmatprep.mubr.bf16.mxu1 %v1796_v2 }
  0x64   : > { %1558 = vmatmul.mubr.msk.bf16.vlgmr.msra.gmra.mrb[0].mxu0 %vm527_vm2, %v1977_v28  ;;  %1562 = vmatmul.mubr.msk.bf16.vlgmr.msra.gmra.mrb[0].mxu1 %vm527_vm2, %v1977_v28 }
  0x65   : > { %1134 = vmatpush1.bf16.msra.mxu0 %v1746_v23  ;;  %1205 = vmatpush1.bf16.msra.mxu1 %v1749_v33 }
  0x66   : > { %954 = vmatprep.mubr.bf16.mxu0 %v1796_v2  ;;  %1025 = vmatprep.mubr.bf16.mxu1 %v1796_v2 }
  0x6c   : > { %1559 = vmatmul.mubr.msk.bf16.gmra.mrb[4].mxu0 %vm527_vm2, %v1981_v29  ;;  %1563 = vmatmul.mubr.msk.bf16.gmra.mrb[4].mxu1 %vm527_vm2, %v1981_v29 }
  0x6d   : > { %964 = vmatprep.mubr.bf16.mxu0 %v1796_v2  ;;  %1035 = vmatprep.mubr.bf16.mxu1 %v1796_v2 }
  0x74   : > { %1560 = vmatmul.mubr.msk.bf16.gmra.mrb[8].mxu0 %vm527_vm2, %v1985_v35  ;;  %1564 = vmatmul.mubr.msk.bf16.gmra.mrb[8].mxu1 %vm527_vm2, %v1985_v35 }
  0x75   : > { %974 = vmatprep.mubr.bf16.mxu0 %v1796_v2  ;;  %1045 = vmatprep.mubr.bf16.mxu1 %v1796_v2 }
  0x7c   : > { %1561 = vmatmul.mubr.msk.bf16.gmra.mrb[12].mxu0 %vm527_vm2, %v1553_v44  ;;  %1565 = vmatmul.mubr.msk.bf16.gmra.mrb[12].mxu1 %vm527_vm2, %v1553_v44 }
  0x7d   : > { %1165 = vmatprep.mubr.bf16.mxu0 %v1796_v2  ;;  %1236 = vmatprep.mubr.bf16.mxu1 %v1796_v2 }
  0x84   : > { %1574 = vmatmul.mubr.msk.bf16.vlgmr.msra.gmra.mrb[0].mxu0 %vm527_vm2, %v1962_v12  ;;  %1578 = vmatmul.mubr.msk.bf16.vlgmr.msra.gmra.mrb[0].mxu1 %vm527_vm2, %v1962_v12 }
  0x85   : > { %1175 = vmatprep.mubr.bf16.mxu0 %v1796_v2  ;;  %1246 = vmatprep.mubr.bf16.mxu1 %v1796_v2 }
  0x8c   : > { %1575 = vmatmul.mubr.msk.bf16.gmra.mrb[4].mxu0 %vm527_vm2, %v1991_v40  ;;  %1579 = vmatmul.mubr.msk.bf16.gmra.mrb[4].mxu1 %vm527_vm2, %v1991_v40 }
  0x8d   : > { %1185 = vmatprep.mubr.bf16.mxu0 %v1796_v2  ;;  %1256 = vmatprep.mubr.bf16.mxu1 %v1796_v2 }
  0x94   : > { %1576 = vmatmul.mubr.msk.bf16.gmra.mrb[8].mxu0 %vm527_vm2, %v2001_v47  ;;  %1580 = vmatmul.mubr.msk.bf16.gmra.mrb[8].mxu1 %vm527_vm2, %v2001_v47 }
  0x95   : > { %1195 = vmatprep.mubr.bf16.mxu0 %v1796_v2  ;;  %1266 = vmatprep.mubr.bf16.mxu1 %v1796_v2  ;;  %v2109_v2 = vld [vmem:[%s2148_s3] ss:$0 sm:$0xff] }
  0x9c   : > { %1577 = vmatmul.mubr.msk.bf16.gmra.mrb[12].mxu0 %vm527_vm2, %v1569_v58  ;;  %1581 = vmatmul.mubr.msk.bf16.gmra.mrb[12].mxu1 %vm527_vm2, %v1569_v58 }
 0x157   : > { %v1167_v59 = vpop.f32.mrb[0].mxu0  ;;  %v1238_v60 = vpop.f32.mrb[0].mxu1 }
 0x158   : > { %v1169_v61 = vpop.f32.mrb[1].mxu0  ;;  %v1240_v62 = vpop.f32.mrb[1].mxu1 }
 0x159   : > { %v1303_v63 = vmax.f32 %v1167_v59, %v1169_v61  ;;  %v1310_v0 = vmax.f32 %v1238_v60, %v1240_v62  ;;  %v1171_v1 = vpop.f32.mrb[2].mxu0  ;;  %v1242_v3 = vpop.f32.mrb[2].mxu1 }
 0x15a   : > { %v1173_v4 = vpop.f32.mrb[3].mxu0  ;;  %v1244_v5 = vpop.f32.mrb[3].mxu1 }
 0x15b   : > { %v1317_v6 = vmax.f32 %v1303_v63, %v1310_v0  ;;  %v1304_v8 = vmax.f32 %v1171_v1, %v1173_v4  ;;  %v1311_v10 = vmax.f32 %v1242_v3, %v1244_v5 }
 0x15d   : > { %v1331_v11 = vadd.f32 %v2109_v2, %v1317_v6  ;;  %v1318_v12 = vmax.f32 %v1304_v8, %v1311_v10 }
 0x15f   : > { %v1338_v13 = vmax.f32 %v1331_v11, 0.0  ;;  %v1332_v14 = vadd.f32 %v2109_v2, %v1318_v12  ;;  %v1177_v15 = vpop.f32.mrb[4].mxu0  ;;  %v1248_v16 = vpop.f32.mrb[4].mxu1 }
 0x160   : > { %v1179_v18 = vpop.f32.mrb[5].mxu0  ;;  %v1250_v19 = vpop.f32.mrb[5].mxu1 }
 0x161   : > { %1345 = vst [vmem:[%s2115_s13] sm:$0xff] %v1338_v13  ;;  %v1339_v20 = vmax.f32 %v1332_v14, 0.0  ;;  %v1305_v21 = vmax.f32 %v1177_v15, %v1179_v18  ;;  %v1312_v22 = vmax.f32 %v1248_v16, %v1250_v19  ;;  %v1181_v24 = vpop.f32.mrb[6].mxu0  ;;  %v1252_v25 = vpop.f32.mrb[6].mxu1 }
 0x162   : > { %v1183_v26 = vpop.f32.mrb[7].mxu0  ;;  %v1254_v27 = vpop.f32.mrb[7].mxu1 }
 0x163   : > { %1346 = vst [vmem:[%s2115_s13 + $0x8] sm:$0xff] %v1339_v20  ;;  %v1319_v28 = vmax.f32 %v1305_v21, %v1312_v22  ;;  %v1306_v29 = vmax.f32 %v1181_v24, %v1183_v26  ;;  %v1313_v30 = vmax.f32 %v1252_v25, %v1254_v27 }
 0x165   : > { %v1333_v31 = vadd.f32 %v2109_v2, %v1319_v28  ;;  %v1320_v32 = vmax.f32 %v1306_v29, %v1313_v30 }
 0x167   : > { %v1340_v35 = vmax.f32 %v1333_v31, 0.0  ;;  %v1334_v36 = vadd.f32 %v2109_v2, %v1320_v32  ;;  %v1187_v37 = vpop.f32.mrb[8].mxu0  ;;  %v1258_v38 = vpop.f32.mrb[8].mxu1 }
 0x168   : > { %v1189_v39 = vpop.f32.mrb[9].mxu0  ;;  %v1260_v40 = vpop.f32.mrb[9].mxu1 }
 0x169   : > { %1347 = vst [vmem:[%s2115_s13 + $0x10] sm:$0xff] %v1340_v35  ;;  %v1341_v41 = vmax.f32 %v1334_v36, 0.0  ;;  %v1307_v42 = vmax.f32 %v1187_v37, %v1189_v39  ;;  %v1314_v43 = vmax.f32 %v1258_v38, %v1260_v40  ;;  %v1191_v45 = vpop.f32.mrb[10].mxu0  ;;  %v1262_v46 = vpop.f32.mrb[10].mxu1 }
 0x16a   : > { %v1193_v47 = vpop.f32.mrb[11].mxu0  ;;  %v1264_v48 = vpop.f32.mrb[11].mxu1 }
 0x16b   : > { %1348 = vst [vmem:[%s2115_s13 + $0x18] sm:$0xff] %v1341_v41  ;;  %v1321_v49 = vmax.f32 %v1307_v42, %v1314_v43  ;;  %v1308_v50 = vmax.f32 %v1191_v45, %v1193_v47  ;;  %v1315_v51 = vmax.f32 %v1262_v46, %v1264_v48 }
 0x16d   : > { %v1335_v52 = vadd.f32 %v2109_v2, %v1321_v49  ;;  %v1322_v53 = vmax.f32 %v1308_v50, %v1315_v51 }
 0x16f   : > { %v1342_v34 = vmax.f32 %v1335_v52, 0.0  ;;  %v1336_v54 = vadd.f32 %v2109_v2, %v1322_v53  ;;  %v1197_v55 = vpop.f32.mrb[12].mxu0  ;;  %v1268_v56 = vpop.f32.mrb[12].mxu1 }
 0x170   : > { %v1199_v57 = vpop.f32.mrb[13].mxu0  ;;  %v1270_v7 = vpop.f32.mrb[13].mxu1 }
 0x171   : > { %1349 = vst [vmem:[%s2115_s13 + $0x20] sm:$0xff] %v1342_v34  ;;  %v1343_v9 = vmax.f32 %v1336_v54, 0.0  ;;  %v1309_v17 = vmax.f32 %v1197_v55, %v1199_v57  ;;  %v1316_v23 = vmax.f32 %v1268_v56, %v1270_v7  ;;  %v1201_v33 = vpop.f32.mrb[14].mxu0  ;;  %v1272_v44 = vpop.f32.mrb[14].mxu1 }
 0x172   : > { %v1202_v58 = vpop.f32.mrb[15].mxu0  ;;  %v1273_v59 = vpop.f32.mrb[15].mxu1 }
 0x173   : > { %1350 = vst [vmem:[%s2115_s13 + $0x28] sm:$0xff] %v1343_v9  ;;  %v1323_v60 = vmax.f32 %v1309_v17, %v1316_v23 }
 0x175   : > { %v1337_v61 = vadd.f32 %v2109_v2, %v1323_v60 }
 0x177   : > { %v1344_v62 = vmax.f32 %v1337_v61, 0.0 }
 0x179   : > { %1351 = vst [vmem:[%s2115_s13 + $0x30] sm:$0xff] %v1344_v62 }
 0x17a PF: > { %s14_s19 = sadd.s32 1, %s1794_s19   ;;  %s2152_s15 = smov %s1786_s17 }
 0x17b   : > { %p11_p9 = scmp.ge.s32.totalorder %s14_s19, 6   ;;  %s2153_s16 = smov %s1790_s18 }
 0x17c   : > { %s2154_s17 = smov %s2157_s20  ;;  %s2155_s18 = smov %s2161_s21 }
 0x17d   :  { %13 = sbr.rel (!%p11_p9) target bundleno = 3 (0x3), region = 75 }

</bundles_post_ra>
